<compile_context>
chip_gen: v6e
topology: v6e:2x2x1
jax: 0.10.0
libtpu: 0.0.40
codegen_flags: <defaults>
</compile_context>

<pallas_src>
import jax
import jax.numpy as jnp
from jax.experimental import pallas as pl
from jax.experimental.pallas import tpu as pltpu


def _reg_density_kernel(x_ref, w1_ref, tb1_ref, w2_ref, b2_ref, c_ref,
                        dx_ref, sc_ref):
    x = x_ref[...]                                             # [tb, D]

    # hidden layer: MXU matmul + fused time-conditioned bias + tanh (EUP)
    h = jnp.tanh(
        jnp.dot(x, w1_ref[...], preferred_element_type=jnp.float32)
        + tb1_ref[...])                                        # [tb, H]

    # dx/dt
    dx = (jnp.dot(h, w2_ref[...], preferred_element_type=jnp.float32)
          + b2_ref[...])                                       # [tb, D]
    dx_ref[...] = dx.astype(dx_ref.dtype)

    # Lane-dense scalar outputs, packed as [2, tb]:
    #   row 0: -div  (exact divergence, negated per instantaneous change of variables)
    #   row 1: reg   (kinetic energy ||dx||^2 per sample)
    # Each reduction is a [1, K] · [tb, K]^T dot so the result is produced
    # directly in [1, tb] (lane-major) layout -> single unmasked store.
    one_m_h2 = 1.0 - h * h                                     # [tb, H]
    ndiv = -jax.lax.dot_general(
        c_ref[...], one_m_h2, (((1,), (1,)), ((), ())),
        preferred_element_type=jnp.float32)                    # [1, tb]
    ones_d = jnp.ones((1, dx.shape[1]), jnp.float32)
    reg = jax.lax.dot_general(
        ones_d, dx * dx, (((1,), (1,)), ((), ())),
        preferred_element_type=jnp.float32)                    # [1, tb]
    sc_ref[...] = jnp.concatenate([ndiv, reg], axis=0).astype(sc_ref.dtype)


def _choose_tb(B):
    # Prefer large, lane-aligned (multiple-of-128) batch tiles to amortize the
    # ~0.35 us/step pipeline overhead, while keeping >=2 grid steps so both
    # v7x TensorCores get work. Fall back to a single full-array tile for
    # tiny batches (block == full array dim is always layout-legal).
    for cand in (512, 384, 256, 128):
        if B % cand == 0 and B // cand >= 2:
            return cand
    for cand in (512, 384, 256, 128):
        if B % cand == 0:
            return cand
    return B


def regularized_density_dynamics(t, state, params, *, tb=None):
    """Pallas equivalent of RegularizedDensityDynamics.forward(t, state).

    state = (x, logp); logp (last entry) is ignored, as in the PyTorch module.
    Returns (dx, -div, reg_term).
    """
    *xs, _logp = state
    (x,) = xs
    B, D = x.shape
    W1, w1t, b1, W2, b2 = params
    H = W1.shape[1]

    if tb is None:
        tb = _choose_tb(B)
    assert B % tb == 0 and (tb % 128 == 0 or tb == B), (B, tb)

    # Parameter-only glue, computed once outside the kernel:
    #   fold time conditioning into a single bias; c_j = sum_i W1[i,j]*W2[j,i]
    tb1 = (jnp.float32(t) * w1t + b1).astype(jnp.float32)      # [1, H]
    c = jnp.sum(W1.T * W2, axis=1).reshape(1, H).astype(jnp.float32)

    grid = (B // tb,)
    dx, packed = pl.pallas_call(
        _reg_density_kernel,
        out_shape=(
            jax.ShapeDtypeStruct((B, D), jnp.float32),         # dx
            jax.ShapeDtypeStruct((2, B), jnp.float32),         # [-div; reg]
        ),
        grid=grid,
        in_specs=[
            pl.BlockSpec((tb, D), lambda i: (i, 0)),           # x
            pl.BlockSpec((D, H), lambda i: (0, 0)),            # W1
            pl.BlockSpec((1, H), lambda i: (0, 0)),            # t*w1t + b1
            pl.BlockSpec((H, D), lambda i: (0, 0)),            # W2
            pl.BlockSpec((1, D), lambda i: (0, 0)),            # b2
            pl.BlockSpec((1, H), lambda i: (0, 0)),            # c
        ],
        out_specs=(
            pl.BlockSpec((tb, D), lambda i: (i, 0)),
            pl.BlockSpec((2, tb), lambda i: (0, i)),
        ),
        compiler_params=pltpu.CompilerParams(
            dimension_semantics=("parallel",)),
    )(x, W1, tb1, W2, b2, c)

    ndiv = packed[0][:, None]                                  # [B, 1]
    reg = packed[1][:, None]                                   # [B, 1]
    return dx, ndiv, reg


def _reference(t, state, params):
    *xs, _logp = state
    (x,) = xs
    W1, w1t, b1, W2, b2 = params
    h = jnp.tanh(x @ W1 + t * w1t + b1)
    dx = h @ W2 + b2
    c = jnp.sum(W1.T * W2, axis=1)[None, :]
    div = jnp.sum((1.0 - h * h) * c, axis=-1, keepdims=True)
    reg = jnp.sum(dx * dx, axis=-1, keepdims=True)
    return dx, -div, reg


if __name__ == "__main__":
    B, D, H = 512, 16, 32
    key = jax.random.PRNGKey(0)
    kx, k1, k1t, kb1, k2, kb2 = jax.random.split(key, 6)

    x = jax.random.normal(kx, (B, D), jnp.float32)
    logp = jnp.zeros((B, 1), jnp.float32)          # last state entry (ignored)
    state = (x, logp)
    t = 0.5

    params = (
        0.1 * jax.random.normal(k1, (D, H), jnp.float32),    # W1
        0.1 * jax.random.normal(k1t, (1, H), jnp.float32),   # w1t (time conditioning)
        0.1 * jax.random.normal(kb1, (1, H), jnp.float32),   # b1
        0.1 * jax.random.normal(k2, (H, D), jnp.float32),    # W2
        0.1 * jax.random.normal(kb2, (1, D), jnp.float32),   # b2
    )

    dx, ndiv, reg = regularized_density_dynamics(t, state, params)
    jax.block_until_ready((dx, ndiv, reg))

    dx_r, ndiv_r, reg_r = _reference(t, state, params)
    assert jnp.allclose(dx, dx_r, atol=1e-4, rtol=1e-4)
    assert jnp.allclose(ndiv, ndiv_r, atol=1e-4, rtol=1e-4)
    assert jnp.allclose(reg, reg_r, atol=1e-4, rtol=1e-4)

    print("KERNEL_OK")
</pallas_src>

<mosaic_0001>
module attributes {stable_mosaic.version = 11 : i64} {
  func.func @_reg_density_kernel(%arg0: i32, %arg1: memref<256x16xf32, #tpu.memory_space<vmem>>, %arg2: memref<16x32xf32, #tpu.memory_space<vmem>>, %arg3: memref<1x32xf32, #tpu.memory_space<vmem>>, %arg4: memref<32x16xf32, #tpu.memory_space<vmem>>, %arg5: memref<1x16xf32, #tpu.memory_space<vmem>>, %arg6: memref<1x32xf32, #tpu.memory_space<vmem>>, %arg7: memref<256x16xf32, #tpu.memory_space<vmem>>, %arg8: memref<2x256xf32, #tpu.memory_space<vmem>>) attributes {dimension_semantics = [#tpu.dimension_semantics<parallel>], iteration_bounds = array<i64: 2>, scalar_prefetch = 0 : i64, scratch_operands = 0 : i64, tpu.core_type = #tpu.core_type<tc>, window_params = [{transform_indices = @transform_0, window_bounds = array<i64: 256, 16>}, {pipeline_mode = #tpu.pipeline_mode<synchronous>, transform_indices = @transform_1, window_bounds = array<i64: 16, 32>}, {pipeline_mode = #tpu.pipeline_mode<synchronous>, transform_indices = @transform_2, window_bounds = array<i64: 1, 32>}, {pipeline_mode = #tpu.pipeline_mode<synchronous>, transform_indices = @transform_3, window_bounds = array<i64: 32, 16>}, {pipeline_mode = #tpu.pipeline_mode<synchronous>, transform_indices = @transform_4, window_bounds = array<i64: 1, 16>}, {pipeline_mode = #tpu.pipeline_mode<synchronous>, transform_indices = @transform_5, window_bounds = array<i64: 1, 32>}, {transform_indices = @transform_6, window_bounds = array<i64: 256, 16>}, {transform_indices = @transform_7, window_bounds = array<i64: 2, 256>}]} {
    %c0 = arith.constant 0 : index
    %c0_0 = arith.constant 0 : index
    %0 = vector.load %arg1[%c0, %c0_0] : memref<256x16xf32, #tpu.memory_space<vmem>>, vector<256x16xf32>
    %c0_1 = arith.constant 0 : index
    %c0_2 = arith.constant 0 : index
    %1 = vector.load %arg2[%c0_1, %c0_2] : memref<16x32xf32, #tpu.memory_space<vmem>>, vector<16x32xf32>
    %cst = arith.constant dense<0.000000e+00> : vector<256x32xf32>
    %2 = tpu.matmul %0, %1, %cst {dimension_numbers = #tpu.dot_dimension_numbers<[1], [0], [0], [1], [0, 0, 1, 1], [], []>} : vector<256x16xf32>, vector<16x32xf32>, vector<256x32xf32> -> vector<256x32xf32>
    %c0_3 = arith.constant 0 : index
    %c0_4 = arith.constant 0 : index
    %3 = vector.load %arg3[%c0_3, %c0_4] : memref<1x32xf32, #tpu.memory_space<vmem>>, vector<1x32xf32>
    %4 = vector.broadcast %3 : vector<1x32xf32> to vector<256x32xf32>
    %5 = arith.addf %2, %4 : vector<256x32xf32>
    %6 = math.tanh %5 : vector<256x32xf32>
    %c0_5 = arith.constant 0 : index
    %c0_6 = arith.constant 0 : index
    %7 = vector.load %arg4[%c0_5, %c0_6] : memref<32x16xf32, #tpu.memory_space<vmem>>, vector<32x16xf32>
    %cst_7 = arith.constant dense<0.000000e+00> : vector<256x16xf32>
    %8 = tpu.matmul %6, %7, %cst_7 {dimension_numbers = #tpu.dot_dimension_numbers<[1], [0], [0], [1], [0, 0, 1, 1], [], []>} : vector<256x32xf32>, vector<32x16xf32>, vector<256x16xf32> -> vector<256x16xf32>
    %c0_8 = arith.constant 0 : index
    %c0_9 = arith.constant 0 : index
    %9 = vector.load %arg5[%c0_8, %c0_9] : memref<1x16xf32, #tpu.memory_space<vmem>>, vector<1x16xf32>
    %10 = vector.broadcast %9 : vector<1x16xf32> to vector<256x16xf32>
    %11 = arith.addf %8, %10 : vector<256x16xf32>
    %c0_10 = arith.constant 0 : index
    %c0_11 = arith.constant 0 : index
    %12 = vector.load %arg7[%c0_10, %c0_11] : memref<256x16xf32, #tpu.memory_space<vmem>>, vector<256x16xf32>
    tpu.vector_store %arg7[%c0_10, %c0_11], %11 {strides = array<i32>} : memref<256x16xf32, #tpu.memory_space<vmem>>, vector<256x16xf32>,
    %13 = arith.mulf %6, %6 : vector<256x32xf32>
    %cst_12 = arith.constant 1.000000e+00 : f32
    %14 = vector.broadcast %cst_12 : f32 to vector<256x32xf32>
    %15 = arith.subf %14, %13 : vector<256x32xf32>
    %c0_13 = arith.constant 0 : index
    %c0_14 = arith.constant 0 : index
    %16 = vector.load %arg6[%c0_13, %c0_14] : memref<1x32xf32, #tpu.memory_space<vmem>>, vector<1x32xf32>
    %cst_15 = arith.constant dense<0.000000e+00> : vector<1x256xf32>
    %17 = tpu.matmul %16, %15, %cst_15 {dimension_numbers = #tpu.dot_dimension_numbers<[1], [1], [0], [0], [0, 0, 1, 0], [], []>} : vector<1x32xf32>, vector<256x32xf32>, vector<1x256xf32> -> vector<1x256xf32>
    %cst_16 = arith.constant 0.000000e+00 : f32
    %18 = vector.broadcast %cst_16 : f32 to vector<1x256xf32>
    %19 = arith.subf %18, %17 : vector<1x256xf32>
    %cst_17 = arith.constant 1.000000e+00 : f32
    %20 = vector.broadcast %cst_17 : f32 to vector<1x16xf32>
    %21 = arith.mulf %11, %11 : vector<256x16xf32>
    %cst_18 = arith.constant dense<0.000000e+00> : vector<1x256xf32>
    %22 = tpu.matmul %20, %21, %cst_18 {dimension_numbers = #tpu.dot_dimension_numbers<[1], [1], [0], [0], [0, 0, 1, 0], [], []>} : vector<1x16xf32>, vector<256x16xf32>, vector<1x256xf32> -> vector<1x256xf32>
    %23 = tpu.concatenate %19, %22 in 0 : vector<1x256xf32>, vector<1x256xf32> -> vector<2x256xf32>
    %c0_19 = arith.constant 0 : index
    %c0_20 = arith.constant 0 : index
    %24 = vector.load %arg8[%c0_19, %c0_20] : memref<2x256xf32, #tpu.memory_space<vmem>>, vector<2x256xf32>
    tpu.vector_store %arg8[%c0_19, %c0_20], %23 {strides = array<i32>} : memref<2x256xf32, #tpu.memory_space<vmem>>, vector<2x256xf32>,
    return
  }
  func.func @transform_0(%arg0: i32) -> (i32, i32) {
    %c0_i32 = arith.constant 0 : i32
    %c0_i32_0 = arith.constant 0 : i32
    return %arg0, %c0_i32 : i32, i32
  }
  func.func @transform_1(%arg0: i32) -> (i32, i32) {
    %c0_i32 = arith.constant 0 : i32
    %c0_i32_0 = arith.constant 0 : i32
    %c0_i32_1 = arith.constant 0 : i32
    return %c0_i32, %c0_i32_0 : i32, i32
  }
  func.func @transform_2(%arg0: i32) -> (i32, i32) {
    %c0_i32 = arith.constant 0 : i32
    %c0_i32_0 = arith.constant 0 : i32
    %c0_i32_1 = arith.constant 0 : i32
    return %c0_i32, %c0_i32_0 : i32, i32
  }
  func.func @transform_3(%arg0: i32) -> (i32, i32) {
    %c0_i32 = arith.constant 0 : i32
    %c0_i32_0 = arith.constant 0 : i32
    %c0_i32_1 = arith.constant 0 : i32
    return %c0_i32, %c0_i32_0 : i32, i32
  }
  func.func @transform_4(%arg0: i32) -> (i32, i32) {
    %c0_i32 = arith.constant 0 : i32
    %c0_i32_0 = arith.constant 0 : i32
    %c0_i32_1 = arith.constant 0 : i32
    return %c0_i32, %c0_i32_0 : i32, i32
  }
  func.func @transform_5(%arg0: i32) -> (i32, i32) {
    %c0_i32 = arith.constant 0 : i32
    %c0_i32_0 = arith.constant 0 : i32
    %c0_i32_1 = arith.constant 0 : i32
    return %c0_i32, %c0_i32_0 : i32, i32
  }
  func.func @transform_6(%arg0: i32) -> (i32, i32) {
    %c0_i32 = arith.constant 0 : i32
    %c0_i32_0 = arith.constant 0 : i32
    return %arg0, %c0_i32 : i32, i32
  }
  func.func @transform_7(%arg0: i32) -> (i32, i32) {
    %c0_i32 = arith.constant 0 : i32
    %c0_i32_0 = arith.constant 0 : i32
    return %c0_i32, %arg0 : i32, i32
  }
}

</mosaic_0001>

<bundles_post_ra>
// kernel: tpu_custom_call.1
= control target key start
LH: loop header
LB: loop body
LE: loop exit
PB: predicated region body
PF: predicated region fallthrough
CT: control target
= control target key end

     0   :  { %13 = vsyncpa [#allocation3], 0  ;;  %s2864_s0 = inlined_call_operand.vmem [shape: f32[512,16], index: 0, kind: input, shape index: {}]   ;;  %s2865_s1 = inlined_call_operand.vmem [shape: f32[16,32], index: 1, kind: input, shape index: {}]   ;;  %s2866_s2 = inlined_call_operand.vmem [shape: f32[1,32], index: 2, kind: input, shape index: {}]   ;;  %s2867_s3 = inlined_call_operand.vmem [shape: f32[32,16], index: 3, kind: input, shape index: {}]   ;;  %s2868_s4 = inlined_call_operand.vmem [shape: f32[1,16], index: 4, kind: input, shape index: {}]   ;;  %s2869_s5 = inlined_call_operand.vmem [shape: f32[1,32], index: 5, kind: input, shape index: {}]   ;;  %s2870_s6 = inlined_call_operand.vmem [shape: f32[512,16], index: 6, kind: output, shape index: {0}]   ;;  %s2871_s7 = inlined_call_operand.hbm [shape: f32[2,512], index: 7, kind: output, shape index: {1}]  }
   0x1   :  { %15 = vsyncpa [#allocation3 + $0x1], 0  ;;  %s2224_s24 = smov 0   ;;  %s2226_s25 = smov 0  }
   0x2   :  { %s2228_s26 = smov 0   ;;  %s2230_s27 = smov 0  }
   0x3 LB: > { %s2245_s28 = sadd.s32 4294967295, %s2180_s27   ;;  %s1622_s29 = sadd.s32 4294967294, %s2180_s27   ;;  %s2180_s27 = sphi %s2230_s27, %s2877_s27   ;;  %s2176_s26 = sphi %s2228_s26, %s2876_s26   ;;  %s2172_s25 = sphi %s2226_s25, %s2875_s25   ;;  %s2168_s24 = sphi %s2224_s24, %s2874_s24  }
   0x4   : > { %s2249_s30 = sadd.s32 1, %s2180_s27   ;;  %s185_s8 = sadd.s32 1, %s2176_s26 }
   0x5   : > { %s182_s9 = ssub.s32 %s2180_s27, %s2249_s30  ;;  %p195_p0 = scmp.ne.s32.totalorder %s2176_s26, %s2172_s25 }
   0x6   : > { %p183_p1 = scmp.eq.s32.totalorder %s182_s9, 0  ;;  %p196_p2 = scmp.eq.s32.totalorder %s2245_s28, 1 }
   0x7   : > { %p201_p3 = scmp.ne.s32.totalorder %s2172_s25, %s2168_s24  ;;  %p202_p4 = scmp.eq.s32.totalorder %s1622_s29, 1 }
   0x8   : > { %s2260_s10 = scalar_select %p183_p1, %s2176_s26, %s185_s8  }
   0x9   : > { %p2262_p5 = por %p196_p2, %p195_p0  ;;  %p2266_p6 = por %p202_p4, %p201_p3 }
   0xa   : > { %p1625_p7 = scmp.ge.s32.totalorder %s2180_s27, 1  ;;  %p244_p8 = scmp.lt.s32.totalorder %s2180_s27, 3 }
   0xc   : > { %p245_p9 = pnand %p1625_p7, %p244_p8 }
   0xd   : > { %s1627_s17 = sshll.u32 (!%p245_p9), %s2245_s28, 5  ;;  %s1769_s13 = sshll.u32 (!%p245_p9), %s2245_s28, 6 }
   0xe   : > { %248 = sbr.rel (%p245_p9) target bundleno = 770 (0x302), region = 44  ;;  %p282_p10 = scmp.lt.s32.totalorder (!%p245_p9), %s1627_s17, 63 }
   0xf   : > { %s1536_s20 = scalar_lea.hbm (!%p245_p9), %s2871_s7, %s1769_s13  ;;  %s2183_s23 = smov (!%p245_p9), [#allocation2]  }
  0x10   : > { %s2124_s29 = sshll.u32 (!%p245_p9), %s2183_s23, 4  ;;  %s2125_s29 = int_to_ptr.vmem [resolvable:$false] %s2124_s29 }
  0x11   : > { %s2126_s28 = scalar_lea.vmem (!%p245_p9), %s2125_s29, 128 }
  0x13   : > { %v327_v0 = vld [vmem:[%s2865_s1 + $0x8] sm:$0xff]  ;;  %v326_v1 = vld [vmem:[%s2865_s1] sm:$0xff]  ;;  %s2879_s17 = smov (!%p282_p10, %s1627_s17), 63  ;;  %vm335_vm0 = vcmask 130048   ;;  %v692_v34 = vld [vmem:[%s2867_s3 + $0x18] sm:$0xff]  ;;  %vm700_vm1 = vcmask 261120  }
  0x14   : > { %1908 = vmatprep.subr.mxu0 %v327_v0  ;;  %s1628_s18 = sshll.u32 %s2879_s17, 3  ;;  %1960 = vmatprep.subr.mxu1 %v692_v34  ;;  %v691_v35 = vld [vmem:[%s2867_s3 + $0x10] sm:$0xff]  ;;  %v690_v36 = vld [vmem:[%s2867_s3 + $0x8] sm:$0xff]  ;;  %v689_v37 = vld [vmem:[%s2867_s3] sm:$0xff]  ;;  %s278_s17 = sand.u32 1, %s2172_s25   ;;  %vm1499_vm2 = vcmask 1040384  }
  0x15   : > { %1909 = vmatpush3.msra.mxu0 %v327_v0  ;;  %s2287_s21 = scalar_lea.vmem %s2864_s0, %s1628_s18  ;;  %1961 = vmatpush3.msra.mxu1 %v692_v34  ;;  %v2368_v38 = vld [vmem:[%s2866_s2] ss:$0 sm:$0xff]  ;;  %s2598_s9 = scalar_lea.vmem %s2870_s6, %s1628_s18 }
  0x16   : > { %1910 = vmatprep.subr.mxu0 %v326_v1  ;;  %v294_v2 = vld [vmem:[%s2287_s21] sm:$0xff]  ;;  %v295_v3 = vld [vmem:[%s2287_s21 + $0x8] sm:$0xff]  ;;  %v296_v4 = vld [vmem:[%s2287_s21 + $0x10] sm:$0xff]  ;;  %1962 = vmatprep.subr.mxu1 %v691_v35  ;;  %s1626_s18 = sshll.u32 %s278_s17, 2 }
  0x17   : > { %1911 = vmatpush3.msra.mxu0 %v326_v1  ;;  %1912 = vmatprep.mubr.msk.f32.mxu0 %vm335_vm0, %v294_v2  ;;  %v297_v5 = vld [vmem:[%s2287_s21 + $0x18] sm:$0xff]  ;;  %v298_v6 = vld [vmem:[%s2287_s21 + $0x20] sm:$0xff]  ;;  %v299_v7 = vld [vmem:[%s2287_s21 + $0x28] sm:$0xff]  ;;  %s280_s14 = scalar_lea.vmem [#allocation2], %s1626_s18 }
  0x18   : > { %1913 = vmatmul.mubr.msk.f32.vlgmr.msra.gmra.mxu0 %vm335_vm0, %v295_v3  ;;  %v300_v8 = vld [vmem:[%s2287_s21 + $0x30] sm:$0xff]  ;;  %v301_v9 = vld [vmem:[%s2287_s21 + $0x38] sm:$0xff]  ;;  %v302_v10 = vld [vmem:[%s2287_s21 + $0x40] sm:$0xff]  ;;  %1963 = vmatpush3.msra.mxu1 %v691_v35  ;;  %s1538_s15 = sshll.u32 %s280_s14, 4  ;;  %s1539_s15 = int_to_ptr.vmem [resolvable:$true] %s1538_s15 }
  0x19   : > { %1915 = vmatprep.mubr.msk.f32.mxu0 %vm335_vm0, %v296_v4  ;;  %v303_v11 = vld [vmem:[%s2287_s21 + $0x48] sm:$0xff]  ;;  %v304_v12 = vld [vmem:[%s2287_s21 + $0x50] sm:$0xff]  ;;  %v305_v13 = vld [vmem:[%s2287_s21 + $0x58] sm:$0xff]  ;;  %1964 = vmatprep.subr.mxu1 %v690_v36  ;;  %s2120_s22 = scalar_lea.vmem %s1539_s15, 64  ;;  %p2127_p0 = scmp.lt.s32.totalorder %s1539_s15, %s2125_s29 }
  0x1a   : > { %v306_v14 = vld [vmem:[%s2287_s21 + $0x60] sm:$0xff]  ;;  %v307_v15 = vld [vmem:[%s2287_s21 + $0x68] sm:$0xff]  ;;  %v308_v16 = vld [vmem:[%s2287_s21 + $0x70] sm:$0xff]  ;;  %1965 = vmatpush3.msra.mxu1 %v690_v36  ;;  %p2121_p11 = scmp.ne.s32.totalorder %s1539_s15, %s2120_s22  ;;  %p2128_p1 = scmp.lt.s32.totalorder %s2126_s28, %s2120_s22 }
  0x1b   : > { %v309_v17 = vld [vmem:[%s2287_s21 + $0x78] sm:$0xff]  ;;  %v310_v18 = vld [vmem:[%s2287_s21 + $0x80] sm:$0xff]  ;;  %v311_v19 = vld [vmem:[%s2287_s21 + $0x88] sm:$0xff]  ;;  %1966 = vmatprep.subr.mxu1 %v689_v37 }
  0x1c   : > { %1916 = vmatmul.mubr.msk.f32.gmra.mxu0 %vm335_vm0, %v297_v5  ;;  %v312_v20 = vld [vmem:[%s2287_s21 + $0x90] sm:$0xff]  ;;  %v313_v21 = vld [vmem:[%s2287_s21 + $0x98] sm:$0xff]  ;;  %v314_v22 = vld [vmem:[%s2287_s21 + $0xa0] sm:$0xff]  ;;  %1967 = vmatpush3.msra.mxu1 %v689_v37  ;;  %p2122_p12 = pnand %p2121_p11, %p2262_p5  ;;  %p2129_p2 = por %p2128_p1, %p2127_p0 }
  0x1d   : > { %1918 = vmatprep.mubr.msk.f32.mxu0 %vm335_vm0, %v298_v6  ;;  %v315_v23 = vld [vmem:[%s2287_s21 + $0xa8] sm:$0xff]  ;;  %v316_v24 = vld [vmem:[%s2287_s21 + $0xb0] sm:$0xff]  ;;  %v317_v25 = vld [vmem:[%s2287_s21 + $0xb8] sm:$0xff] }
  0x1e   : > { %v318_v26 = vld [vmem:[%s2287_s21 + $0xc0] sm:$0xff]  ;;  %v319_v27 = vld [vmem:[%s2287_s21 + $0xc8] sm:$0xff]  ;;  %v320_v28 = vld [vmem:[%s2287_s21 + $0xd0] sm:$0xff]  ;;  %p2123_p13 = pneg %p2122_p12 }
  0x1f   : > { %v321_v29 = vld [vmem:[%s2287_s21 + $0xd8] sm:$0xff]  ;;  %v322_v30 = vld [vmem:[%s2287_s21 + $0xe0] sm:$0xff]  ;;  %v323_v31 = vld [vmem:[%s2287_s21 + $0xe8] sm:$0xff] }
  0x20   : > { %1919 = vmatmul.mubr.msk.f32.gmra.mxu0 %vm335_vm0, %v299_v7  ;;  %v324_v32 = vld [vmem:[%s2287_s21 + $0xf0] sm:$0xff]  ;;  %v325_v33 = vld [vmem:[%s2287_s21 + $0xf8] sm:$0xff]  ;;  %s1520_s21 = scalar_lea.sflag [#allocation3], %s278_s17  ;;  %p2130_p3 = pnand %p2129_p2, %p2123_p13 }
  0x21   : > { %1921 = vmatprep.mubr.msk.f32.mxu0 %vm335_vm0, %v300_v8 }
  0x24   : > { %1922 = vmatmul.mubr.msk.f32.gmra.mxu0 %vm335_vm0, %v301_v9 }
  0x25   : > { %1924 = vmatprep.mubr.msk.f32.mxu0 %vm335_vm0, %v302_v10 }
  0x28   : > { %1925 = vmatmul.mubr.msk.f32.gmra.mxu0 %vm335_vm0, %v303_v11 }
  0x29   : > { %1927 = vmatprep.mubr.msk.f32.mxu0 %vm335_vm0, %v304_v12 }
  0x2c   : > { %1928 = vmatmul.mubr.msk.f32.gmra.mxu0 %vm335_vm0, %v305_v13 }
  0x2d   : > { %1930 = vmatprep.mubr.msk.f32.mxu0 %vm335_vm0, %v306_v14 }
  0x30   : > { %1931 = vmatmul.mubr.msk.f32.gmra.mxu0 %vm335_vm0, %v307_v15 }
  0x31   : > { %1933 = vmatprep.mubr.msk.f32.mxu0 %vm335_vm0, %v308_v16 }
  0x34   : > { %1934 = vmatmul.mubr.msk.f32.gmra.mxu0 %vm335_vm0, %v309_v17 }
  0x35   : > { %1936 = vmatprep.mubr.msk.f32.mxu0 %vm335_vm0, %v310_v18 }
  0x38   : > { %1937 = vmatmul.mubr.msk.f32.gmra.mxu0 %vm335_vm0, %v311_v19 }
  0x39   : > { %1939 = vmatprep.mubr.msk.f32.mxu0 %vm335_vm0, %v312_v20 }
  0x3c   : > { %1940 = vmatmul.mubr.msk.f32.gmra.mxu0 %vm335_vm0, %v313_v21 }
  0x3d   : > { %1942 = vmatprep.mubr.msk.f32.mxu0 %vm335_vm0, %v314_v22 }
  0x40   : > { %1943 = vmatmul.mubr.msk.f32.gmra.mxu0 %vm335_vm0, %v315_v23 }
  0x41   : > { %1945 = vmatprep.mubr.msk.f32.mxu0 %vm335_vm0, %v316_v24 }
  0x44   : > { %1946 = vmatmul.mubr.msk.f32.gmra.mxu0 %vm335_vm0, %v317_v25 }
  0x45   : > { %1948 = vmatprep.mubr.msk.f32.mxu0 %vm335_vm0, %v318_v26 }
  0x48   : > { %1949 = vmatmul.mubr.msk.f32.gmra.mxu0 %vm335_vm0, %v319_v27 }
  0x49   : > { %1951 = vmatprep.mubr.msk.f32.mxu0 %vm335_vm0, %v320_v28 }
  0x4c   : > { %1952 = vmatmul.mubr.msk.f32.gmra.mxu0 %vm335_vm0, %v321_v29 }
  0x4d   : > { %1954 = vmatprep.mubr.msk.f32.mxu0 %vm335_vm0, %v322_v30 }
  0x50   : > { %1955 = vmatmul.mubr.msk.f32.gmra.mxu0 %vm335_vm0, %v323_v31 }
  0x51   : > { %1957 = vmatprep.mubr.msk.f32.mxu0 %vm335_vm0, %v324_v32 }
  0x54   : > { %1958 = vmatmul.mubr.msk.f32.gmra.mxu0 %vm335_vm0, %v325_v33 }
  0xd8   : > { %v1914_v39 = vpop.f32.mrf.mxu0 }
  0xd9   : > { %v504_v40 = vadd.f32 %v1914_v39, %v2368_v38 }
  0xda   : > { %v498_v41 = vpop.f32.mrf.mxu0 }
  0xdb   : > { %v499_v42 = vadd.f32 %v2368_v38, %v498_v41 }
  0xdc   : > { %v1917_v43 = vpop.f32.mrf.mxu0 }
  0xdd   : > { %2056 = vtanh.f32 %v499_v42  ;;  %v514_v44 = vadd.f32 %v1917_v43, %v2368_v38 }
  0xde   : > { %2058 = vtanh.f32 %v504_v40  ;;  %v508_v45 = vpop.f32.mrf.mxu0 }
  0xdf   : > { %v509_v46 = vadd.f32 %v2368_v38, %v508_v45 }
  0xe0   : > { %v1920_v47 = vpop.f32.mrf.mxu0 }
  0xe1   : > { %2060 = vtanh.f32 %v509_v46  ;;  %v524_v48 = vadd.f32 %v1920_v47, %v2368_v38 }
  0xe2   : > { %2062 = vtanh.f32 %v514_v44  ;;  %v518_v49 = vpop.f32.mrf.mxu0 }
  0xe3   : > { %v519_v50 = vadd.f32 %v2368_v38, %v518_v49 }
  0xe4   : > { %v1923_v51 = vpop.f32.mrf.mxu0 }
  0xe5   : > { %2064 = vtanh.f32 %v519_v50  ;;  %v534_v52 = vadd.f32 %v1923_v51, %v2368_v38 }
  0xe6   : > { %2066 = vtanh.f32 %v524_v48  ;;  %v528_v53 = vpop.f32.mrf.mxu0 }
  0xe7   : > { %v529_v54 = vadd.f32 %v2368_v38, %v528_v53 }
  0xe8   : > { %v1926_v55 = vpop.f32.mrf.mxu0 }
  0xe9   : > { %2068 = vtanh.f32 %v529_v54  ;;  %v544_v57 = vadd.f32 %v1926_v55, %v2368_v38 }
  0xea   : > { %v2378_v56 = vpop.eup %2056  ;;  %2070 = vtanh.f32 %v534_v52  ;;  %v538_v58 = vpop.f32.mrf.mxu0 }
  0xeb   : > { %v2381_v59 = vpop.eup %2058  ;;  %v539_v60 = vadd.f32 %v2368_v38, %v538_v58  ;;  %1968 = vmatprep.mubr.msk.f32.mxu1 %vm700_vm1, %v2378_v56 }
  0xec   : > { %v1929_v61 = vpop.f32.mrf.mxu0  ;;  %1969 = vmatmul.mubr.msk.f32.vlgmr.msra.gmra.mxu1 %vm700_vm1, %v2381_v59 }
  0xed   : > { %2072 = vtanh.f32 %v539_v60  ;;  %v554_v63 = vadd.f32 %v1929_v61, %v2368_v38 }
  0xee   : > { %v2388_v62 = vpop.eup %2060  ;;  %2074 = vtanh.f32 %v544_v57  ;;  %v548_v0 = vpop.f32.mrf.mxu0 }
  0xef   : > { %v2391_v1 = vpop.eup %2062  ;;  %v549_v2 = vadd.f32 %v2368_v38, %v548_v0  ;;  %1971 = vmatprep.mubr.msk.f32.mxu1 %vm700_vm1, %v2388_v62 }
  0xf0   : > { %v1932_v3 = vpop.f32.mrf.mxu0  ;;  %1972 = vmatmul.mubr.msk.f32.gmra.mxu1 %vm700_vm1, %v2391_v1 }
  0xf1   : > { %2076 = vtanh.f32 %v549_v2  ;;  %v564_v5 = vadd.f32 %v1932_v3, %v2368_v38 }
  0xf2   : > { %v2398_v4 = vpop.eup %2064  ;;  %2078 = vtanh.f32 %v554_v63  ;;  %v558_v6 = vpop.f32.mrf.mxu0 }
  0xf3   : > { %v2401_v7 = vpop.eup %2066  ;;  %v559_v8 = vadd.f32 %v2368_v38, %v558_v6  ;;  %1974 = vmatprep.mubr.msk.f32.mxu1 %vm700_vm1, %v2398_v4 }
  0xf4   : > { %v1935_v9 = vpop.f32.mrf.mxu0  ;;  %1975 = vmatmul.mubr.msk.f32.gmra.mxu1 %vm700_vm1, %v2401_v7 }
  0xf5   : > { %2080 = vtanh.f32 %v559_v8  ;;  %v574_v11 = vadd.f32 %v1935_v9, %v2368_v38 }
  0xf6   : > { %v2408_v10 = vpop.eup %2068  ;;  %2082 = vtanh.f32 %v564_v5  ;;  %v568_v12 = vpop.f32.mrf.mxu0 }
  0xf7   : > { %v2411_v13 = vpop.eup %2070  ;;  %v569_v14 = vadd.f32 %v2368_v38, %v568_v12  ;;  %1977 = vmatprep.mubr.msk.f32.mxu1 %vm700_vm1, %v2408_v10 }
  0xf8   : > { %v1938_v15 = vpop.f32.mrf.mxu0  ;;  %1978 = vmatmul.mubr.msk.f32.gmra.mxu1 %vm700_vm1, %v2411_v13 }
  0xf9   : > { %2084 = vtanh.f32 %v569_v14  ;;  %v584_v17 = vadd.f32 %v1938_v15, %v2368_v38 }
  0xfa   : > { %v2418_v16 = vpop.eup %2072  ;;  %2086 = vtanh.f32 %v574_v11  ;;  %v578_v18 = vpop.f32.mrf.mxu0 }
  0xfb   : > { %v2421_v19 = vpop.eup %2074  ;;  %v579_v20 = vadd.f32 %v2368_v38, %v578_v18  ;;  %1980 = vmatprep.mubr.msk.f32.mxu1 %vm700_vm1, %v2418_v16 }
  0xfc   : > { %v1941_v21 = vpop.f32.mrf.mxu0  ;;  %1981 = vmatmul.mubr.msk.f32.gmra.mxu1 %vm700_vm1, %v2421_v19 }
  0xfd   : > { %2088 = vtanh.f32 %v579_v20  ;;  %v594_v23 = vadd.f32 %v1941_v21, %v2368_v38 }
  0xfe   : > { %v2428_v22 = vpop.eup %2076  ;;  %2090 = vtanh.f32 %v584_v17  ;;  %v588_v24 = vpop.f32.mrf.mxu0 }
  0xff   : > { %v2431_v25 = vpop.eup %2078  ;;  %v589_v26 = vadd.f32 %v2368_v38, %v588_v24  ;;  %1983 = vmatprep.mubr.msk.f32.mxu1 %vm700_vm1, %v2428_v22 }
 0x100   : > { %v1944_v27 = vpop.f32.mrf.mxu0  ;;  %1984 = vmatmul.mubr.msk.f32.gmra.mxu1 %vm700_vm1, %v2431_v25 }
 0x101   : > { %2092 = vtanh.f32 %v589_v26  ;;  %v604_v29 = vadd.f32 %v1944_v27, %v2368_v38 }
 0x102   : > { %v2438_v28 = vpop.eup %2080  ;;  %2094 = vtanh.f32 %v594_v23  ;;  %v598_v30 = vpop.f32.mrf.mxu0 }
 0x103   : > { %v2441_v31 = vpop.eup %2082  ;;  %v599_v32 = vadd.f32 %v2368_v38, %v598_v30  ;;  %1986 = vmatprep.mubr.msk.f32.mxu1 %vm700_vm1, %v2438_v28 }
 0x104   : > { %v1947_v33 = vpop.f32.mrf.mxu0  ;;  %1987 = vmatmul.mubr.msk.f32.gmra.mxu1 %vm700_vm1, %v2441_v31 }
 0x105   : > { %2096 = vtanh.f32 %v599_v32  ;;  %v614_v35 = vadd.f32 %v1947_v33, %v2368_v38 }
 0x106   : > { %v2448_v34 = vpop.eup %2084  ;;  %2098 = vtanh.f32 %v604_v29  ;;  %v608_v36 = vpop.f32.mrf.mxu0  ;;  %v1067_v29 = vmul.f32 %v2441_v31, %v2441_v31  ;;  %v1065_v31 = vmul.f32 %v2431_v25, %v2431_v25  ;;  %v1063_v25 = vmul.f32 %v2421_v19, %v2421_v19 }
 0x107   : > { %v2087_v37 = vpop.eup %2086  ;;  %v609_v39 = vadd.f32 %v2368_v38, %v608_v36  ;;  %1989 = vmatprep.mubr.msk.f32.mxu1 %vm700_vm1, %v2448_v34  ;;  %v1068_v23 = vmul.f32 %v2448_v34, %v2448_v34  ;;  %v1066_v34 = vmul.f32 %v2438_v28, %v2438_v28  ;;  %v1064_v28 = vmul.f32 %v2428_v22, %v2428_v22 }
 0x108   : > { %v1950_v40 = vpop.f32.mrf.mxu0  ;;  %1990 = vmatmul.mubr.msk.f32.gmra.mxu1 %vm700_vm1, %v2087_v37  ;;  %v1069_v14 = vmul.f32 %v2087_v37, %v2087_v37  ;;  %v1099_v33 = vsub.f32 1.0, %v1067_v29  ;;  %v1062_v22 = vmul.f32 %v2418_v16, %v2418_v16  ;;  %v1061_v19 = vmul.f32 %v2411_v13, %v2411_v13 }
 0x109   : > { %2100 = vtanh.f32 %v609_v39  ;;  %v624_v42 = vadd.f32 %v1950_v40, %v2368_v38  ;;  %v1100_v27 = vsub.f32 1.0, %v1068_v23  ;;  %v1098_v37 = vsub.f32 1.0, %v1066_v34 }
 0x10a   : > { %v2455_v41 = vpop.eup %2088  ;;  %2102 = vtanh.f32 %v614_v35  ;;  %v618_v43 = vpop.f32.mrf.mxu0  ;;  %v1101_v21 = vsub.f32 1.0, %v1069_v14  ;;  %v1093_v16 = vsub.f32 1.0, %v1061_v19 }
 0x10b   : > { %v2458_v44 = vpop.eup %2090  ;;  %v619_v45 = vadd.f32 %v2368_v38, %v618_v43  ;;  %1992 = vmatprep.mubr.msk.f32.mxu1 %vm700_vm1, %v2455_v41 }
 0x10c   : > { %v1953_v46 = vpop.f32.mrf.mxu0  ;;  %1993 = vmatmul.mubr.msk.f32.gmra.mxu1 %vm700_vm1, %v2458_v44 }
 0x10d   : > { %2104 = vtanh.f32 %v619_v45  ;;  %v634_v48 = vadd.f32 %v1953_v46, %v2368_v38  ;;  %v1096_v46 = vsub.f32 1.0, %v1064_v28 }
 0x10e   : > { %v2465_v47 = vpop.eup %2092  ;;  %2106 = vtanh.f32 %v624_v42  ;;  %v628_v49 = vpop.f32.mrf.mxu0  ;;  %v1097_v42 = vsub.f32 1.0, %v1065_v31 }
 0x10f   : > { %v2468_v50 = vpop.eup %2094  ;;  %v629_v51 = vadd.f32 %v2368_v38, %v628_v49  ;;  %1995 = vmatprep.mubr.msk.f32.mxu1 %vm700_vm1, %v2465_v47 }
 0x110   : > { %v1956_v52 = vpop.f32.mrf.mxu0  ;;  %1996 = vmatmul.mubr.msk.f32.gmra.mxu1 %vm700_vm1, %v2468_v50 }
 0x111   : > { %2108 = vtanh.f32 %v629_v51  ;;  %v644_v54 = vadd.f32 %v1956_v52, %v2368_v38  ;;  %v1095_v51 = vsub.f32 1.0, %v1063_v25 }
 0x112   : > { %v2475_v53 = vpop.eup %2096  ;;  %2110 = vtanh.f32 %v634_v48  ;;  %v638_v55 = vpop.f32.mrf.mxu0 }
 0x113   : > { %v2478_v57 = vpop.eup %2098  ;;  %v639_v58 = vadd.f32 %v2368_v38, %v638_v55  ;;  %1998 = vmatprep.mubr.msk.f32.mxu1 %vm700_vm1, %v2475_v53  ;;  %v1094_v55 = vsub.f32 1.0, %v1062_v22 }
 0x114   : > { %v1959_v60 = vpop.f32.mrf.mxu0  ;;  %1999 = vmatmul.mubr.msk.f32.gmra.mxu1 %vm700_vm1, %v2478_v57 }
 0x115   : > { %2112 = vtanh.f32 %v639_v58  ;;  %v654_v61 = vadd.f32 %v1959_v60, %v2368_v38 }
 0x116   : > { %v2486_v63 = vpop.eup %2100  ;;  %2114 = vtanh.f32 %v644_v54  ;;  %v648_v0 = vpop.f32.mrf.mxu0 }
 0x117   : > { %v2488_v2 = vpop.eup %2102  ;;  %2116 = vtanh.f32 %v654_v61  ;;  %v649_v3 = vadd.f32 %v2368_v38, %v648_v0  ;;  %2001 = vmatprep.mubr.msk.f32.mxu1 %vm700_vm1, %v2486_v63  ;;  %v1076_v60 = vmul.f32 %v2486_v63, %v2486_v63  ;;  %v1060_v61 = vmul.f32 %v2408_v10, %v2408_v10 }
 0x118   : > { %2002 = vmatmul.mubr.msk.f32.gmra.mxu1 %vm700_vm1, %v2488_v2  ;;  %v1077_v54 = vmul.f32 %v2488_v2, %v2488_v2  ;;  %v1075_v2 = vmul.f32 %v2478_v57, %v2478_v57  ;;  %v1059_v63 = vmul.f32 %v2401_v7, %v2401_v7  ;;  %v1058_v57 = vmul.f32 %v2398_v4, %v2398_v4 }
 0x119   : > { %2118 = vtanh.f32 %v649_v3  ;;  %v1108_v0 = vsub.f32 1.0, %v1076_v60  ;;  %v1092_v13 = vsub.f32 1.0, %v1060_v61 }
 0x11a   : > { %v2105_v5 = vpop.eup %2104  ;;  %v1109_v58 = vsub.f32 1.0, %v1077_v54  ;;  %v1107_v3 = vsub.f32 1.0, %v1075_v2  ;;  %v1091_v10 = vsub.f32 1.0, %v1059_v63  ;;  %v1090_v7 = vsub.f32 1.0, %v1058_v57 }
 0x11b   : > { %v2107_v6 = vpop.eup %2106  ;;  %2004 = vmatprep.mubr.msk.f32.mxu1 %vm700_vm1, %v2105_v5  ;;  %v1078_v49 = vmul.f32 %v2105_v5, %v2105_v5  ;;  %v1074_v5 = vmul.f32 %v2475_v53, %v2475_v53  ;;  %v1057_v53 = vmul.f32 %v2391_v1, %v2391_v1 }
 0x11c   : > { %2005 = vmatmul.mubr.msk.f32.gmra.mxu1 %vm700_vm1, %v2107_v6  ;;  %v1079_v45 = vmul.f32 %v2107_v6, %v2107_v6 }
 0x11d   : > { %v1110_v52 = vsub.f32 1.0, %v1078_v49  ;;  %v1106_v6 = vsub.f32 1.0, %v1074_v5  ;;  %v1089_v4 = vsub.f32 1.0, %v1057_v53 }
 0x11e   : > { %v2109_v8 = vpop.eup %2108  ;;  %v1111_v48 = vsub.f32 1.0, %v1079_v45 }
 0x11f   : > { %v2111_v9 = vpop.eup %2110  ;;  %2007 = vmatprep.mubr.msk.f32.mxu1 %vm700_vm1, %v2109_v8  ;;  %v1080_v40 = vmul.f32 %v2109_v8, %v2109_v8  ;;  %v1073_v8 = vmul.f32 %v2468_v50, %v2468_v50  ;;  %v1056_v50 = vmul.f32 %v2388_v62, %v2388_v62 }
 0x120   : > { %2008 = vmatmul.mubr.msk.f32.gmra.mxu1 %vm700_vm1, %v2111_v9  ;;  %v1081_v36 = vmul.f32 %v2111_v9, %v2111_v9 }
 0x121   : > { %v1112_v43 = vsub.f32 1.0, %v1080_v40  ;;  %v1105_v9 = vsub.f32 1.0, %v1073_v8  ;;  %v1088_v1 = vsub.f32 1.0, %v1056_v50 }
 0x122   : > { %v2113_v38 = vpop.eup %2112  ;;  %v1113_v39 = vsub.f32 1.0, %v1081_v36 }
 0x123   : > { %v2115_v11 = vpop.eup %2114  ;;  %2010 = vmatprep.mubr.msk.f32.mxu1 %vm700_vm1, %v2113_v38  ;;  %v1082_v32 = vmul.f32 %v2113_v38, %v2113_v38  ;;  %v1072_v38 = vmul.f32 %v2465_v47, %v2465_v47  ;;  %v1055_v47 = vmul.f32 %v2381_v59, %v2381_v59  ;;  %v1118_v59 = vld [vmem:[%s2869_s5] sm:$0x1] }
 0x124   : > { %v2117_v12 = vpop.eup %2116  ;;  %2011 = vmatmul.mubr.msk.f32.gmra.mxu1 %vm700_vm1, %v2115_v11  ;;  %v1083_v26 = vmul.f32 %v2115_v11, %v2115_v11  ;;  %1872 = vmatprep.mubr.msk.f32.mxu0 %vm700_vm1, %v1118_v59 }
 0x125   : > { %v1085_v15 = vmul.f32 %v2117_v12, %v2117_v12  ;;  %v1114_v35 = vsub.f32 1.0, %v1082_v32  ;;  %v1104_v11 = vsub.f32 1.0, %v1072_v38  ;;  %v1087_v62 = vsub.f32 1.0, %v1055_v47 }
 0x126   : > { %v2119_v17 = vpop.eup %2118  ;;  %v1115_v30 = vsub.f32 1.0, %v1083_v26 }
 0x127   : > { %2013 = vmatprep.mubr.msk.f32.mxu1 %vm700_vm1, %v2119_v17  ;;  %v1117_v18 = vsub.f32 1.0, %v1085_v15  ;;  %v1084_v20 = vmul.f32 %v2119_v17, %v2119_v17  ;;  %v1070_v15 = vmul.f32 %v2455_v41, %v2455_v41  ;;  %v2587_v41 = vld [vmem:[%s2868_s4] ss:$0 sm:$0xff] }
 0x128   : > { %2014 = vmatmul.mubr.msk.f32.gmra.mxu1 %vm700_vm1, %v2117_v12  ;;  %v1071_v12 = vmul.f32 %v2458_v44, %v2458_v44  ;;  %v1054_v44 = vmul.f32 %v2378_v56, %v2378_v56  ;;  %v2182_v56 = vmov 1.0  }
 0x129   : > { %1840 = vmatprep.subr.msk.mxu0 %vm700_vm1, %v1117_v18  ;;  %v1116_v24 = vsub.f32 1.0, %v1084_v20  ;;  %v1102_v17 = vsub.f32 1.0, %v1070_v15  ;;  %1906 = vmatprep.mubr.msk.f32.mxu1 %vm335_vm0, %v2182_v56 }
 0x12a   : > { %1841 = vmatpush3.xpose.msk.msra.mxu0 %vm700_vm1, %v1101_v21  ;;  %v1103_v14 = vsub.f32 1.0, %v1071_v12  ;;  %v1086_v18 = vsub.f32 1.0, %v1054_v44 }
 0x12b   : > { %1842 = vmatprep.subr.msk.mxu0 %vm700_vm1, %v1116_v24 }
 0x12e   : > { %1843 = vmatpush3.xpose.msk.msra.mxu0 %vm700_vm1, %v1100_v27 }
 0x12f   : > { %1844 = vmatprep.subr.msk.mxu0 %vm700_vm1, %v1115_v30 }
 0x132   : > { %1845 = vmatpush3.xpose.msk.msra.mxu0 %vm700_vm1, %v1099_v33 }
 0x133   : > { %1846 = vmatprep.subr.msk.mxu0 %vm700_vm1, %v1114_v35 }
 0x136   : > { %1847 = vmatpush3.xpose.msk.msra.mxu0 %vm700_vm1, %v1098_v37 }
 0x137   : > { %1848 = vmatprep.subr.msk.mxu0 %vm700_vm1, %v1113_v39 }
 0x13a   : > { %1849 = vmatpush3.xpose.msk.msra.mxu0 %vm700_vm1, %v1097_v42 }
 0x13b   : > { %1850 = vmatprep.subr.msk.mxu0 %vm700_vm1, %v1112_v43 }
 0x13e   : > { %1851 = vmatpush3.xpose.msk.msra.mxu0 %vm700_vm1, %v1096_v46 }
 0x13f   : > { %1852 = vmatprep.subr.msk.mxu0 %vm700_vm1, %v1111_v48 }
 0x142   : > { %1853 = vmatpush3.xpose.msk.msra.mxu0 %vm700_vm1, %v1095_v51 }
 0x143   : > { %1854 = vmatprep.subr.msk.mxu0 %vm700_vm1, %v1110_v52 }
 0x146   : > { %1855 = vmatpush3.xpose.msk.msra.mxu0 %vm700_vm1, %v1094_v55 }
 0x147   : > { %1856 = vmatprep.subr.msk.mxu0 %vm700_vm1, %v1109_v58 }
 0x14a   : > { %1857 = vmatpush3.xpose.msk.msra.mxu0 %vm700_vm1, %v1093_v16 }
 0x14b   : > { %1858 = vmatprep.subr.msk.mxu0 %vm700_vm1, %v1108_v0 }
 0x14e   : > { %1859 = vmatpush3.xpose.msk.msra.mxu0 %vm700_vm1, %v1092_v13 }
 0x14f   : > { %1860 = vmatprep.subr.msk.mxu0 %vm700_vm1, %v1107_v3 }
 0x152   : > { %1861 = vmatpush3.xpose.msk.msra.mxu0 %vm700_vm1, %v1091_v10 }
 0x153   : > { %1862 = vmatprep.subr.msk.mxu0 %vm700_vm1, %v1106_v6 }
 0x156   : > { %1863 = vmatpush3.xpose.msk.msra.mxu0 %vm700_vm1, %v1090_v7 }
 0x157   : > { %1864 = vmatprep.subr.msk.mxu0 %vm700_vm1, %v1105_v9 }
 0x15a   : > { %1865 = vmatpush3.xpose.msk.msra.mxu0 %vm700_vm1, %v1089_v4 }
 0x15b   : > { %1866 = vmatprep.subr.msk.mxu0 %vm700_vm1, %v1104_v11 }
 0x15e   : > { %1867 = vmatpush3.xpose.msk.msra.mxu0 %vm700_vm1, %v1088_v1 }
 0x15f   : > { %1868 = vmatprep.subr.msk.mxu0 %vm700_vm1, %v1103_v14 }
 0x162   : > { %1869 = vmatpush3.xpose.msk.msra.mxu0 %vm700_vm1, %v1087_v62 }
 0x163   : > { %1870 = vmatprep.subr.msk.mxu0 %vm700_vm1, %v1102_v17 }
 0x166   : > { %1871 = vmatpush3.xpose.msk.msra.mxu0 %vm700_vm1, %v1086_v18 }
 0x169   : > { %1873 = vmatmul.mubr.msk.f32.vlgmr.msra.gmra.mxu0 %vm700_vm1, %v1118_v59 }
 0x1ac   : > { %v1970_v20 = vpop.f32.mrf.mxu1 }
 0x1ad   : > { %v2601_v21 = vadd.f32 %v1970_v20, %v2587_v41 }
 0x1ae   : > { %v863_v23 = vpop.f32.mrf.mxu1 }
 0x1af   : > { %1023 = vst.msk [vmem:[%s2598_s9 + $0x8] sm:$0xff] %vm335_vm0, %v2601_v21  ;;  %v2607_v24 = vadd.f32 %v2587_v41, %v863_v23 }
 0x1b0   : > { %v1973_v26 = vpop.f32.mrf.mxu1 }
 0x1b1   : > { %1022 = vst.msk [vmem:[%s2598_s9] sm:$0xff] %vm335_vm0, %v2607_v24  ;;  %v2613_v27 = vadd.f32 %v1973_v26, %v2587_v41 }
 0x1b2   : > { %v873_v29 = vpop.f32.mrf.mxu1 }
 0x1b3   : > { %1025 = vst.msk [vmem:[%s2598_s9 + $0x18] sm:$0xff] %vm335_vm0, %v2613_v27  ;;  %v2619_v30 = vadd.f32 %v2587_v41, %v873_v29 }
 0x1b4   : > { %v1976_v32 = vpop.f32.mrf.mxu1 }
 0x1b5   : > { %1024 = vst.msk [vmem:[%s2598_s9 + $0x10] sm:$0xff] %vm335_vm0, %v2619_v30  ;;  %v2625_v33 = vadd.f32 %v1976_v32, %v2587_v41 }
 0x1b6   : > { %v883_v34 = vpop.f32.mrf.mxu1 }
 0x1b7   : > { %1027 = vst.msk [vmem:[%s2598_s9 + $0x28] sm:$0xff] %vm335_vm0, %v2625_v33  ;;  %v2631_v35 = vadd.f32 %v2587_v41, %v883_v34 }
 0x1b8   : > { %v1979_v36 = vpop.f32.mrf.mxu1 }
 0x1b9   : > { %1026 = vst.msk [vmem:[%s2598_s9 + $0x20] sm:$0xff] %vm335_vm0, %v2631_v35  ;;  %v2637_v37 = vadd.f32 %v1979_v36, %v2587_v41 }
 0x1ba   : > { %v893_v31 = vpop.f32.mrf.mxu1 }
 0x1bb   : > { %1029 = vst.msk [vmem:[%s2598_s9 + $0x38] sm:$0xff] %vm335_vm0, %v2637_v37  ;;  %v2643_v39 = vadd.f32 %v2587_v41, %v893_v31 }
 0x1bc   : > { %v1982_v40 = vpop.f32.mrf.mxu1 }
 0x1bd   : > { %1028 = vst.msk [vmem:[%s2598_s9 + $0x30] sm:$0xff] %vm335_vm0, %v2643_v39  ;;  %v2649_v42 = vadd.f32 %v1982_v40, %v2587_v41 }
 0x1be   : > { %v903_v28 = vpop.f32.mrf.mxu1 }
 0x1bf   : > { %1031 = vst.msk [vmem:[%s2598_s9 + $0x48] sm:$0xff] %vm335_vm0, %v2649_v42  ;;  %v2655_v43 = vadd.f32 %v2587_v41, %v903_v28 }
 0x1c0   : > { %v1985_v45 = vpop.f32.mrf.mxu1 }
 0x1c1   : > { %1030 = vst.msk [vmem:[%s2598_s9 + $0x40] sm:$0xff] %vm335_vm0, %v2655_v43  ;;  %v2661_v46 = vadd.f32 %v1985_v45, %v2587_v41 }
 0x1c2   : > { %v913_v25 = vpop.f32.mrf.mxu1 }
 0x1c3   : > { %1033 = vst.msk [vmem:[%s2598_s9 + $0x58] sm:$0xff] %vm335_vm0, %v2661_v46  ;;  %v2667_v48 = vadd.f32 %v2587_v41, %v913_v25  ;;  %v1302_v45 = vmul.f32 %v2661_v46, %v2661_v46  ;;  %v1299_v46 = vmul.f32 %v2655_v43, %v2655_v43  ;;  %v1296_v43 = vmul.f32 %v2625_v33, %v2625_v33 }
 0x1c4   : > { %v1988_v49 = vpop.f32.mrf.mxu1  ;;  %v1294_v33 = vmul.f32 %v2613_v27, %v2613_v27  ;;  %v1292_v27 = vmul.f32 %v2601_v21, %v2601_v21 }
 0x1c5   : > { %1032 = vst.msk [vmem:[%s2598_s9 + $0x50] sm:$0xff] %vm335_vm0, %v2667_v48  ;;  %v2673_v51 = vadd.f32 %v1988_v49, %v2587_v41  ;;  %v1301_v49 = vmul.f32 %v2667_v48, %v2667_v48  ;;  %v1298_v48 = vmul.f32 %v2637_v37, %v2637_v37 }
 0x1c6   : > { %v923_v22 = vpop.f32.mrf.mxu1 }
 0x1c7   : > { %1035 = vst.msk [vmem:[%s2598_s9 + $0x68] sm:$0xff] %vm335_vm0, %v2673_v51  ;;  %v2679_v52 = vadd.f32 %v2587_v41, %v923_v22  ;;  %v1304_v31 = vmul.f32 %v2673_v51, %v2673_v51  ;;  %v1300_v22 = vmul.f32 %v2649_v42, %v2649_v42  ;;  %v1297_v42 = vmul.f32 %v2643_v39, %v2643_v39 }
 0x1c8   : > { %v1991_v54 = vpop.f32.mrf.mxu1  ;;  %v1295_v39 = vmul.f32 %v2631_v35, %v2631_v35  ;;  %v1293_v35 = vmul.f32 %v2619_v30, %v2619_v30  ;;  %v1291_v30 = vmul.f32 %v2607_v24, %v2607_v24 }
 0x1c9   : > { %1034 = vst.msk [vmem:[%s2598_s9 + $0x60] sm:$0xff] %vm335_vm0, %v2679_v52  ;;  %v939_v55 = vadd.f32 %v1991_v54, %v2587_v41  ;;  %v1303_v40 = vmul.f32 %v2679_v52, %v2679_v52 }
 0x1ca   : > { %v933_v19 = vpop.f32.mrf.mxu1 }
 0x1cb   : > { %1037 = vst.msk [vmem:[%s2598_s9 + $0x78] sm:$0xff] %vm335_vm0, %v939_v55  ;;  %v934_v58 = vadd.f32 %v2587_v41, %v933_v19  ;;  %v1306_v29 = vmul.f32 %v939_v55, %v939_v55 }
 0x1cc   : > { %v1994_v60 = vpop.f32.mrf.mxu1 }
 0x1cd   : > { %1036 = vst.msk [vmem:[%s2598_s9 + $0x70] sm:$0xff] %vm335_vm0, %v934_v58  ;;  %v2691_v16 = vadd.f32 %v1994_v60, %v2587_v41  ;;  %v1305_v34 = vmul.f32 %v934_v58, %v934_v58 }
 0x1ce   : > { %v943_v61 = vpop.f32.mrf.mxu1 }
 0x1cf   : > { %1039 = vst.msk [vmem:[%s2598_s9 + $0x88] sm:$0xff] %vm335_vm0, %v2691_v16  ;;  %v2697_v0 = vadd.f32 %v2587_v41, %v943_v61  ;;  %v1308_v61 = vmul.f32 %v2691_v16, %v2691_v16 }
 0x1d0   : > { %v1997_v2 = vpop.f32.mrf.mxu1 }
 0x1d1   : > { %1038 = vst.msk [vmem:[%s2598_s9 + $0x80] sm:$0xff] %vm335_vm0, %v2697_v0  ;;  %v2703_v13 = vadd.f32 %v1997_v2, %v2587_v41  ;;  %v1307_v2 = vmul.f32 %v2697_v0, %v2697_v0 }
 0x1d2   : > { %v953_v63 = vpop.f32.mrf.mxu1 }
 0x1d3   : > { %1041 = vst.msk [vmem:[%s2598_s9 + $0x98] sm:$0xff] %vm335_vm0, %v2703_v13  ;;  %v2709_v3 = vadd.f32 %v2587_v41, %v953_v63  ;;  %v1310_v58 = vmul.f32 %v2703_v13, %v2703_v13 }
 0x1d4   : > { %v2000_v5 = vpop.f32.mrf.mxu1 }
 0x1d5   : > { %1040 = vst.msk [vmem:[%s2598_s9 + $0x90] sm:$0xff] %vm335_vm0, %v2709_v3  ;;  %v2715_v10 = vadd.f32 %v2000_v5, %v2587_v41  ;;  %v1309_v60 = vmul.f32 %v2709_v3, %v2709_v3 }
 0x1d6   : > { %v963_v57 = vpop.f32.mrf.mxu1 }
 0x1d7   : > { %1043 = vst.msk [vmem:[%s2598_s9 + $0xa8] sm:$0xff] %vm335_vm0, %v2715_v10  ;;  %v2721_v6 = vadd.f32 %v2587_v41, %v963_v57  ;;  %v1312_v19 = vmul.f32 %v2715_v10, %v2715_v10 }
 0x1d8   : > { %v2003_v8 = vpop.f32.mrf.mxu1 }
 0x1d9   : > { %1042 = vst.msk [vmem:[%s2598_s9 + $0xa0] sm:$0xff] %vm335_vm0, %v2721_v6  ;;  %v979_v7 = vadd.f32 %v2003_v8, %v2587_v41  ;;  %v1311_v37 = vmul.f32 %v2721_v6, %v2721_v6 }
 0x1da   : > { %v973_v53 = vpop.f32.mrf.mxu1 }
 0x1db   : > { %1045 = vst.msk [vmem:[%s2598_s9 + $0xb8] sm:$0xff] %vm335_vm0, %v979_v7  ;;  %v974_v9 = vadd.f32 %v2587_v41, %v973_v53  ;;  %v1314_v54 = vmul.f32 %v979_v7, %v979_v7 }
 0x1dc   : > { %v2006_v38 = vpop.f32.mrf.mxu1 }
 0x1dd   : > { %1044 = vst.msk [vmem:[%s2598_s9 + $0xb0] sm:$0xff] %vm335_vm0, %v974_v9  ;;  %v989_v4 = vadd.f32 %v2006_v38, %v2587_v41  ;;  %v1313_v55 = vmul.f32 %v974_v9, %v974_v9 }
 0x1de   : > { %v983_v50 = vpop.f32.mrf.mxu1 }
 0x1df   : > { %1047 = vst.msk [vmem:[%s2598_s9 + $0xc8] sm:$0xff] %vm335_vm0, %v989_v4  ;;  %v984_v11 = vadd.f32 %v2587_v41, %v983_v50  ;;  %v1316_v51 = vmul.f32 %v989_v4, %v989_v4 }
 0x1e0   : > { %v2009_v12 = vpop.f32.mrf.mxu1 }
 0x1e1   : > { %1046 = vst.msk [vmem:[%s2598_s9 + $0xc0] sm:$0xff] %vm335_vm0, %v984_v11  ;;  %v999_v1 = vadd.f32 %v2009_v12, %v2587_v41  ;;  %v1315_v52 = vmul.f32 %v984_v11, %v984_v11 }
 0x1e2   : > { %v993_v47 = vpop.f32.mrf.mxu1 }
 0x1e3   : > { %1049 = vst.msk [vmem:[%s2598_s9 + $0xd8] sm:$0xff] %vm335_vm0, %v999_v1  ;;  %v994_v14 = vadd.f32 %v2587_v41, %v993_v47  ;;  %v1318_v28 = vmul.f32 %v999_v1, %v999_v1 }
 0x1e4   : > { %v2012_v15 = vpop.f32.mrf.mxu1 }
 0x1e5   : > { %1048 = vst.msk [vmem:[%s2598_s9 + $0xd0] sm:$0xff] %vm335_vm0, %v994_v14  ;;  %v1009_v62 = vadd.f32 %v2012_v15, %v2587_v41  ;;  %v1317_v25 = vmul.f32 %v994_v14, %v994_v14 }
 0x1e6   : > { %v1003_v44 = vpop.f32.mrf.mxu1 }
 0x1e7   : > { %1051 = vst.msk [vmem:[%s2598_s9 + $0xe8] sm:$0xff] %vm335_vm0, %v1009_v62  ;;  %v1004_v17 = vadd.f32 %v2587_v41, %v1003_v44  ;;  %v1320_v36 = vmul.f32 %v1009_v62, %v1009_v62 }
 0x1e8   : > { %v2015_v18 = vpop.f32.mrf.mxu1 }
 0x1e9   : > { %1050 = vst.msk [vmem:[%s2598_s9 + $0xe0] sm:$0xff] %vm335_vm0, %v1004_v17  ;;  %v1019_v59 = vadd.f32 %v2015_v18, %v2587_v41 }
 0x1ea   : > { %v1013_v20 = vpop.f32.mrf.mxu1 }
 0x1eb   : > { %1053 = vst.msk [vmem:[%s2598_s9 + $0xf8] sm:$0xff] %vm335_vm0, %v1019_v59  ;;  %v1322_v23 = vmul.f32 %v1019_v59, %v1019_v59  ;;  %v1014_v26 = vadd.f32 %v2587_v41, %v1013_v20  ;;  %v1319_v41 = vmul.f32 %v1004_v17, %v1004_v17 }
 0x1ed   : > { %1052 = vst.msk [vmem:[%s2598_s9 + $0xf0] sm:$0xff] %vm335_vm0, %v1014_v26  ;;  %v1321_v32 = vmul.f32 %v1014_v26, %v1014_v26  ;;  %1874 = vmatprep.subr.msk.mxu1 %vm335_vm0, %v1322_v23 }
 0x1ee   : > { %1875 = vmatpush3.xpose.msk.msra.mxu1 %vm335_vm0, %v1306_v29 }
 0x1ef   : > { %1876 = vmatprep.subr.msk.mxu1 %vm335_vm0, %v1321_v32 }
 0x1f2   : > { %1877 = vmatpush3.xpose.msk.msra.mxu1 %vm335_vm0, %v1305_v34 }
 0x1f3   : > { %1878 = vmatprep.subr.msk.mxu1 %vm335_vm0, %v1320_v36 }
 0x1f6   : > { %1879 = vmatpush3.xpose.msk.msra.mxu1 %vm335_vm0, %v1304_v31 }
 0x1f7   : > { %1880 = vmatprep.subr.msk.mxu1 %vm335_vm0, %v1319_v41 }
 0x1fa   : > { %1881 = vmatpush3.xpose.msk.msra.mxu1 %vm335_vm0, %v1303_v40 }
 0x1fb   : > { %1882 = vmatprep.subr.msk.mxu1 %vm335_vm0, %v1318_v28 }
 0x1fe   : > { %1883 = vmatpush3.xpose.msk.msra.mxu1 %vm335_vm0, %v1302_v45 }
 0x1ff   : > { %1884 = vmatprep.subr.msk.mxu1 %vm335_vm0, %v1317_v25 }
 0x202   : > { %1885 = vmatpush3.xpose.msk.msra.mxu1 %vm335_vm0, %v1301_v49 }
 0x203   : > { %1886 = vmatprep.subr.msk.mxu1 %vm335_vm0, %v1316_v51 }
 0x206   : > { %1887 = vmatpush3.xpose.msk.msra.mxu1 %vm335_vm0, %v1300_v22 }
 0x207   : > { %1888 = vmatprep.subr.msk.mxu1 %vm335_vm0, %v1315_v52 }
 0x20a   : > { %1889 = vmatpush3.xpose.msk.msra.mxu1 %vm335_vm0, %v1299_v46 }
 0x20b   : > { %1890 = vmatprep.subr.msk.mxu1 %vm335_vm0, %v1314_v54 }
 0x20e   : > { %1891 = vmatpush3.xpose.msk.msra.mxu1 %vm335_vm0, %v1298_v48 }
 0x20f   : > { %1892 = vmatprep.subr.msk.mxu1 %vm335_vm0, %v1313_v55 }
 0x212   : > { %1893 = vmatpush3.xpose.msk.msra.mxu1 %vm335_vm0, %v1297_v42 }
 0x213   : > { %1894 = vmatprep.subr.msk.mxu1 %vm335_vm0, %v1312_v19 }
 0x216   : > { %1895 = vmatpush3.xpose.msk.msra.mxu1 %vm335_vm0, %v1296_v43 }
 0x217   : > { %1896 = vmatprep.subr.msk.mxu1 %vm335_vm0, %v1311_v37 }
 0x21a   : > { %1897 = vmatpush3.xpose.msk.msra.mxu1 %vm335_vm0, %v1295_v39 }
 0x21b   : > { %1898 = vmatprep.subr.msk.mxu1 %vm335_vm0, %v1310_v58 }
 0x21e   : > { %1899 = vmatpush3.xpose.msk.msra.mxu1 %vm335_vm0, %v1294_v33 }
 0x21f   : > { %1900 = vmatprep.subr.msk.mxu1 %vm335_vm0, %v1309_v60 }
 0x222   : > { %1901 = vmatpush3.xpose.msk.msra.mxu1 %vm335_vm0, %v1293_v35 }
 0x223   : > { %1902 = vmatprep.subr.msk.mxu1 %vm335_vm0, %v1308_v61 }
 0x226   : > { %1903 = vmatpush3.xpose.msk.msra.mxu1 %vm335_vm0, %v1292_v27 }
 0x227   : > { %1904 = vmatprep.subr.msk.mxu1 %vm335_vm0, %v1307_v2 }
 0x229   : > { %v1284_v16 = vpop.f32.mrf.mxu0 }
 0x22a   : > { %1905 = vmatpush3.xpose.msk.msra.mxu1 %vm335_vm0, %v1291_v30  ;;  %v1289_v63 = vsub.f32 0.0, %v1284_v16 }
 0x22b   : > { %v1286_v13 = vpop.f32.mrf.mxu0 }
 0x22c   : > { %v1290_v5 = vsub.f32 0.0, %v1286_v13 }
 0x22d   : > { %1907 = vmatmul.mubr.msk.f32.vlgmr.msra.gmra.mxu1 %vm335_vm0, %v2182_v56 }
 0x2ed   : > { %v1488_v21 = vpop.f32.mrf.mxu1 }
 0x2ee   : > { %v1495_v0 = vrot.slane %v1488_v21, 7 }
 0x2ef   : > { %v1490_v3 = vpop.f32.mrf.mxu1 }
 0x2f0   : > { %v1496_v10 = vrot.slane %v1490_v3, 7  ;;  %v1500_v24 = vsel %vm1499_vm2, %v1289_v63, %v1495_v0 }
 0x2f2   : > { %v1501_v57 = vsel %vm1499_vm2, %v1290_v5, %v1496_v10 }
 0x2f3   : > { %v1504_v6 = vcombine.low %v1500_v24, %v1501_v57 }
 0x2f5   : > { %1763 = vst.sshfl [vmem:[%s280_s14] sm:$0x33 pattern:$0x76325410] %v1504_v6 }
 0x2f6   : > { %2133 = shalt.err (!%p2130_p3)
}
 0x2f7   : > { %s2134_s8 = scalar_lea.hbm %s1536_s20, 64  ;;  %s2138_s18 = scalar_lea.hbm %s2871_s7, 128 }
 0x2f8   : > { %p2135_p4 = scmp.ne.s32.totalorder %s1536_s20, %s2134_s8  ;;  %p2139_p9 = scmp.lt.s32.totalorder %s1536_s20, %s2871_s7 }
 0x2f9   : > { %p2140_p10 = scmp.lt.s32.totalorder %s2138_s18, %s2134_s8 }
 0x2fa   : > { %p2136_p7 = pnand %p2135_p4, %p2262_p5 }
 0x2fb   : > { %p2141_p11 = por %p2140_p10, %p2139_p9 }
 0x2fc   : > { %p2137_p8 = pneg %p2136_p7 }
 0x2fe   : > { %p2142_p12 = pnand %p2141_p11, %p2137_p8 }
 0x300   : > { %2145 = shalt.err (!%p2142_p12)
}
 0x301   : > { %2016 = dma.vmem_to_hbm [thread:$0]  (%p2262_p5), %s1539_s15, 64, %s1536_s20, %s1520_s21  }
 0x302 PF: > { %p2022_p13 = scmp.ge.s32.totalorder %s2180_s27, 2  ;;  %s1558_s16 = sand.u32 1, %s2168_s24  }
 0x303   : > { %s1559_s19 = scalar_lea.sflag [#allocation3], %s1558_s16 }
 0x304   : > { %p2019_p0 = pnand %p2022_p13, %p2266_p6 }
 0x306   : > { %p2020_p1 = pneg %p2019_p0 }
 0x308   : > { %2163 = dma.done.wait (%p2020_p1), %s1559_s19, 64  }
 0x309   : > { %2165 = vsyncadd (%p2020_p1), %s1559_s19, 4294967232  ;;  %p18_p2 = scmp.ge.s32.totalorder %s2249_s30, 4   ;;  %s2874_s24 = smov %s2172_s25 }
 0x30a   : > { %s2875_s25 = smov %s2176_s26  ;;  %s2876_s26 = smov %s2260_s10 }
 0x30b   : > { %s2877_s27 = smov %s2249_s30  ;;  %20 = sbr.rel (!%p18_p2) target bundleno = 3 (0x3), region = 91 }
 0x310   :  { %1564 = vsyncpa [#allocation3], 1 }
 0x311   :  { %1566 = vsyncpa [#allocation3 + $0x1], 1 }

</bundles_post_ra>
